<compile_context>
chip_gen: v6e
topology: v6e:2x2x1
jax: 0.10.0
libtpu: 0.0.40
codegen_flags: <defaults>
</compile_context>

<pallas_src>
import functools

import jax
import jax.numpy as jnp
import numpy as np
from jax import lax
from jax.experimental import pallas as pl
from jax.experimental.pallas import tpu as pltpu


# ----------------------------------------------------------------------------
# Kernel: one lane-dense MXU matmul per (image, M-tile) grid step.
# ----------------------------------------------------------------------------
def _conv_matmul_kernel(lhs_ref, w_ref, o_ref):
    # lhs_ref: (1, TM, K)   compute-dtype im2col rows for this M-tile
    # w_ref:   (K, Cp)      compute-dtype weight, VMEM-resident (constant map)
    # o_ref:   (1, TM, Cp)  f32, lane-dense (Cp % 128 == 0, TM % 8 == 0)
    o_ref[0] = jnp.dot(lhs_ref[0], w_ref[...], preferred_element_type=jnp.float32)


def _round_up(x, m):
    return (x + m - 1) // m * m


# ----------------------------------------------------------------------------
# Wrapper: im2col layout plumbing + pallas_call
# ----------------------------------------------------------------------------
@functools.partial(jax.jit, static_argnames=("stride", "padding", "compute_dtype"))
def conv2d_pallas_forward(x_nchw, weight, *, stride, padding,
                          compute_dtype=jnp.bfloat16):
    N, C, H, W = x_nchw.shape
    O, C2, kh, kw = weight.shape
    assert C == C2, (C, C2)
    s, p = stride, padding

    H_out = (H + 2 * p - kh) // s + 1
    W_out = (W + 2 * p - kw) // s + 1
    M = H_out * W_out
    K = kh * kw * C

    # --- build im2col LHS (single fused XLA pass; cast to compute dtype once)
    x = jnp.transpose(x_nchw, (0, 2, 3, 1))                       # NHWC
    x = jnp.pad(x, ((0, 0), (p, p), (p, p), (0, 0)))
    cols = []
    for ki in range(kh):
        for kj in range(kw):
            cols.append(x[:, ki:ki + (H_out - 1) * s + 1:s,
                           kj:kj + (W_out - 1) * s + 1:s, :])
    # (N, H_out, W_out, kh*kw*C)  with K index = (ki*kw + kj)*C + c
    lhs = jnp.concatenate(cols, axis=-1).reshape(N, M, K).astype(compute_dtype)

    # --- M tiling: >=2 tiles per image when possible so DMA pipelines
    if M >= 256:
        TM = 128
    else:
        TM = max(8, ((M + 15) // 16) * 8)
    M_pad = _round_up(M, TM)
    if M_pad != M:
        lhs = jnp.pad(lhs, ((0, 0), (0, M_pad - M), (0, 0)))

    # --- weight: (O, C, kh, kw) -> (K, Cp), Cp lane-dense, wrapper-side cast
    Cp = _round_up(O, 128)
    w = jnp.transpose(weight, (2, 3, 1, 0)).reshape(K, O).astype(compute_dtype)
    if Cp != O:
        w = jnp.pad(w, ((0, 0), (0, Cp - O)))

    # --- generation-aware VMEM budget (account for (8,128) tile padding)
    cbytes = jnp.dtype(compute_dtype).itemsize
    K_lane = _round_up(K, 128)
    blk_lhs = _round_up(TM, 32) * K_lane * cbytes
    blk_w = _round_up(K, 32) * Cp * cbytes
    blk_out = _round_up(TM, 8) * Cp * 4
    need = 2 * blk_lhs + 2 * blk_w + 2 * blk_out
    try:
        cap = int(pltpu.get_tpu_info().vmem_capacity_bytes)
    except Exception:                                  # pragma: no cover
        cap = 64 << 20                                 # v7x per-TC floor
    vmem_limit = int(min(max(2 * need + (8 << 20), 32 << 20), (cap * 3) // 4))

    out = pl.pallas_call(
        _conv_matmul_kernel,
        out_shape=jax.ShapeDtypeStruct((N, M_pad, Cp), jnp.float32),
        grid_spec=pltpu.PrefetchScalarGridSpec(
            num_scalar_prefetch=0,
            grid=(N, M_pad // TM),
            in_specs=[
                # One (TM, K) patch tile per grid step; last dim == full K axis.
                pl.BlockSpec((1, TM, K), lambda n, m: (n, m, 0)),
                # Whole weight, constant index_map -> stays resident in VMEM.
                pl.BlockSpec((K, Cp), lambda n, m: (0, 0)),
            ],
            out_specs=pl.BlockSpec((1, TM, Cp), lambda n, m: (n, m, 0)),
        ),
        compiler_params=pltpu.CompilerParams(
            dimension_semantics=("parallel", "parallel"),
            vmem_limit_bytes=vmem_limit,
        ),
    )(lhs, w)

    # Slice off M / channel padding, restore NCHW.
    out = out[:, :M, :O].reshape(N, H_out, W_out, O)
    return jnp.transpose(out, (0, 3, 1, 2))


# ----------------------------------------------------------------------------
# Conv2d module equivalent (mirrors the PyTorch spec, bias=False)
# ----------------------------------------------------------------------------
class Conv2dPallas:
    def __init__(self, in_channels, out_channels, kernel_size, stride=1,
                 padding=0, *, key):
        self.in_channels = in_channels
        self.out_channels = out_channels
        self.kernel_size = kernel_size
        self.stride = stride
        self.padding = padding
        # Same init formula as the quoted spec module:
        #   k = sqrt(1 / in_channels * kernel_size * kernel_size)
        # (Note: PyTorch's own Conv2d default would be sqrt(1/(C_in*k^2));
        #  we follow the spec as written.)
        k = float(np.sqrt(1.0 / in_channels * kernel_size * kernel_size))
        self.weight = jax.random.uniform(
            key,
            (out_channels, in_channels, kernel_size, kernel_size),
            dtype=jnp.float32,
            minval=-k,
            maxval=k,
        )

    def __call__(self, x_nchw, *, compute_dtype=jnp.bfloat16):
        # bf16 MXU inputs by default (full MXU rate on v6e/v7x); f32 accumulate.
        return conv2d_pallas_forward(
            x_nchw, self.weight,
            stride=self.stride, padding=self.padding,
            compute_dtype=compute_dtype,
        )


# ----------------------------------------------------------------------------
# Demo / correctness check
# ----------------------------------------------------------------------------
if __name__ == "__main__":
    key = jax.random.PRNGKey(0)
    kx, kw_ = jax.random.split(key)

    N, C_in, H, W = 2, 4, 16, 16
    C_out, ksize, stride, padding = 8, 3, 2, 1

    x = jax.random.normal(kx, (N, C_in, H, W), dtype=jnp.float32)
    conv = Conv2dPallas(C_in, C_out, ksize, stride=stride, padding=padding, key=kw_)

    def ref_conv(xx, ww):
        return lax.conv_general_dilated(
            xx, ww,
            window_strides=(stride, stride),
            padding=[(padding, padding), (padding, padding)],
            dimension_numbers=("NCHW", "OIHW", "NCHW"),
        )

    # f32 path: exact check against the plain-JAX conv reference.
    out_f32 = jax.block_until_ready(conv(x, compute_dtype=jnp.float32))
    ref_f32 = ref_conv(x, conv.weight)
    assert out_f32.shape == ref_f32.shape, (out_f32.shape, ref_f32.shape)
    np.testing.assert_allclose(np.asarray(out_f32), np.asarray(ref_f32),
                               atol=2e-4, rtol=2e-4)

    # bf16 MXU path (default): check against a bf16-rounded-input reference
    # (accumulation is f32 in both), so the tolerance stays tight.
    out_bf16 = jax.block_until_ready(conv(x))
    x_r = x.astype(jnp.bfloat16).astype(jnp.float32)
    w_r = conv.weight.astype(jnp.bfloat16).astype(jnp.float32)
    ref_bf16 = ref_conv(x_r, w_r)
    np.testing.assert_allclose(np.asarray(out_bf16), np.asarray(ref_bf16),
                               atol=2e-3, rtol=2e-3)

    print("KERNEL_OK")
</pallas_src>

<mosaic_0001>
module attributes {stable_mosaic.version = 11 : i64} {
  func.func @_conv_matmul_kernel(%arg0: i32, %arg1: i32, %arg2: memref<1x32x36xf32, #tpu.memory_space<vmem>>, %arg3: memref<36x128xf32, #tpu.memory_space<vmem>>, %arg4: memref<1x32x128xf32, #tpu.memory_space<vmem>>) attributes {dimension_semantics = [#tpu.dimension_semantics<parallel>, #tpu.dimension_semantics<parallel>], iteration_bounds = array<i64: 2, 2>, scalar_prefetch = 0 : i64, scratch_operands = 0 : i64, tpu.core_type = #tpu.core_type<tc>, window_params = [{transform_indices = @transform_0, window_bounds = array<i64: 1, 32, 36>}, {pipeline_mode = #tpu.pipeline_mode<synchronous>, transform_indices = @transform_1, window_bounds = array<i64: 36, 128>}, {transform_indices = @transform_2, window_bounds = array<i64: 1, 32, 128>}]} {
    %c0 = arith.constant 0 : index
    %c0_0 = arith.constant 0 : index
    %c0_1 = arith.constant 0 : index
    %0 = vector.load %arg2[%c0, %c0_0, %c0_1] : memref<1x32x36xf32, #tpu.memory_space<vmem>>, vector<1x32x36xf32>
    %1 = vector.shape_cast %0 : vector<1x32x36xf32> to vector<32x36xf32>
    %c0_2 = arith.constant 0 : index
    %c0_3 = arith.constant 0 : index
    %2 = vector.load %arg3[%c0_2, %c0_3] : memref<36x128xf32, #tpu.memory_space<vmem>>, vector<36x128xf32>
    %cst = arith.constant dense<0.000000e+00> : vector<32x128xf32>
    %3 = tpu.matmul %1, %2, %cst {dimension_numbers = #tpu.dot_dimension_numbers<[1], [0], [0], [1], [0, 0, 1, 1], [], []>} : vector<32x36xf32>, vector<36x128xf32>, vector<32x128xf32> -> vector<32x128xf32>
    %c0_4 = arith.constant 0 : index
    %c0_5 = arith.constant 0 : index
    %c0_6 = arith.constant 0 : index
    %4 = vector.load %arg4[%c0_4, %c0_5, %c0_6] : memref<1x32x128xf32, #tpu.memory_space<vmem>>, vector<1x32x128xf32>
    %5 = vector.shape_cast %4 : vector<1x32x128xf32> to vector<32x128xf32>
    %6 = vector.shape_cast %3 : vector<32x128xf32> to vector<1x32x128xf32>
    tpu.vector_store %arg4[%c0_4, %c0_5, %c0_6], %6 {strides = array<i32>} : memref<1x32x128xf32, #tpu.memory_space<vmem>>, vector<1x32x128xf32>,
    return
  }
  func.func @transform_0(%arg0: i32, %arg1: i32) -> (i32, i32, i32) {
    %c0_i32 = arith.constant 0 : i32
    %c0_i32_0 = arith.constant 0 : i32
    return %arg0, %arg1, %c0_i32 : i32, i32, i32
  }
  func.func @transform_1(%arg0: i32, %arg1: i32) -> (i32, i32) {
    %c0_i32 = arith.constant 0 : i32
    %c0_i32_0 = arith.constant 0 : i32
    %c0_i32_1 = arith.constant 0 : i32
    return %c0_i32, %c0_i32_0 : i32, i32
  }
  func.func @transform_2(%arg0: i32, %arg1: i32) -> (i32, i32, i32) {
    %c0_i32 = arith.constant 0 : i32
    %c0_i32_0 = arith.constant 0 : i32
    return %arg0, %arg1, %c0_i32 : i32, i32, i32
  }
}

</mosaic_0001>

<bundles_post_ra>
// kernel: conv2d_pallas_forward.1
= control target key start
LH: loop header
LB: loop body
LE: loop exit
PB: predicated region body
PF: predicated region fallthrough
CT: control target
= control target key end

     0   :  { %s536_s9 = smov 0   ;;  %s538_s10 = smov 0   ;;  %s605_s0 = inlined_call_operand.vmem [shape: f32[2,64,36], index: 0, kind: input, shape index: {}]   ;;  %s606_s1 = inlined_call_operand.vmem [shape: f32[36,128], index: 1, kind: input, shape index: {}]   ;;  %s607_s2 = inlined_call_operand.vmem [shape: f32[2,64,128], index: 2, kind: output, shape index: {}]  }
   0x1   :  { %s540_s11 = smov 0   ;;  %s542_s12 = smov 0  }
   0x2   :  { %s544_s13 = smov 0  }
   0x3 LB: > { %s21_s14 = sadd.s32 1, %s511_s11  ;;  %s24_s15 = sadd.s32 1, %s515_s12  ;;  %s519_s13 = sphi %s544_s13, %s12_s13   ;;  %s515_s12 = sphi %s542_s12, %s611_s12   ;;  %s511_s11 = sphi %s540_s11, %s610_s11   ;;  %s507_s10 = sphi %s538_s10, %s609_s10   ;;  %s503_s9 = sphi %s536_s9, %s608_s9  }
   0x4   : > { %p22_p0 = scmp.ge.s32.totalorder %s21_s14, 2  ;;  %p392_p1 = scmp.ge.s32.totalorder %s519_s13, 1 }
   0x5   : > { %p133_p2 = scmp.lt.s32.totalorder %s519_s13, 5 }
   0x6   : > { %s613_s14 = smov (%p22_p0, %s21_s14), 0  ;;  %s615_s15 = smov (!%p22_p0, %s24_s15), %s515_s12 }
   0x7   : > { %p134_p3 = pnand %p392_p1, %p133_p2  ;;  %p26_p4 = scmp.ge.s32.totalorder %s615_s15, 2 }
   0x8   : > { %s393_s20 = sshll.u32 (!%p134_p3), %s503_s9, 2  ;;  %p164_p5 = scmp.lt.s32.totalorder (!%p134_p3), %s507_s10, 1 }
   0x9   : > { %s617_s15 = smov (%p26_p4, %s615_s15), 0  ;;  %137 = sbr.rel (%p134_p3) target bundleno = 222 (0xde), region = 28 }
   0xa   : > { %p166_p6 = scmp.lt.s32.totalorder (!%p134_p3), %s393_s20, 7 }
   0xe   : > { %v191_v0 = vld [vmem:[%s606_s1 + $0x20] sm:$0xf]  ;;  %vm205_vm0 = vcmask 1043456   ;;  %v190_v1 = vld [vmem:[%s606_s1 + $0x18] sm:$0xff]  ;;  %v189_v2 = vld [vmem:[%s606_s1 + $0x10] sm:$0xff]  ;;  %s619_s10 = smov (!%p164_p5, %s507_s10), 1 }
   0xf   : > { %415 = vmatprep.subr.msk.mxu0 %vm205_vm0, %v191_v0  ;;  %431 = vmatprep.subr.msk.mxu1 %vm205_vm0, %v191_v0  ;;  %v188_v3 = vld [vmem:[%s606_s1 + $0x8] sm:$0xff]  ;;  %s621_s20 = smov (!%p166_p6, %s393_s20), 7  ;;  %s394_s25 = sshll.u32 %s619_s10, 3  ;;  %v187_v4 = vld [vmem:[%s606_s1] sm:$0xff]  ;;  %vm192_vm1 = vcmask 293888  }
  0x10   : > { %416 = vmatpush3.msk.msra.mxu0 %vm205_vm0, %v191_v0  ;;  %436 = vmatpush3.msk.msra.mxu1 %vm205_vm0, %v191_v0  ;;  %s169_s28 = sadd.s32 %s394_s25, %s621_s20 }
  0x11   : > { %417 = vmatprep.subr.mxu0 %v190_v1  ;;  %432 = vmatprep.subr.mxu1 %v190_v1  ;;  %s395_s29 = sshll.u32 %s169_s28, 3 }
  0x12   : > { %418 = vmatpush3.msra.mxu0 %v190_v1  ;;  %437 = vmatpush3.msra.mxu1 %v190_v1  ;;  %s171_s4 = scalar_lea.vmem %s605_s0, %s395_s29  ;;  %s181_s7 = scalar_lea.vmem %s607_s2, %s395_s29 }
  0x13   : > { %419 = vmatprep.subr.mxu0 %v189_v2  ;;  %433 = vmatprep.subr.mxu1 %v189_v2  ;;  %v183_v5 = vld [vmem:[%s171_s4] sm:$0xff]  ;;  %v185_v6 = vld [vmem:[%s171_s4 + $0x10] sm:$0xff]  ;;  %v184_v7 = vld [vmem:[%s171_s4 + $0x8] sm:$0xff] }
  0x14   : > { %420 = vmatpush3.msra.mxu0 %v189_v2  ;;  %438 = vmatpush3.msra.mxu1 %v189_v2  ;;  %v186_v8 = vld [vmem:[%s171_s4 + $0x18] sm:$0xff] }
  0x15   : > { %421 = vmatprep.subr.mxu0 %v188_v3  ;;  %434 = vmatprep.subr.mxu1 %v188_v3 }
  0x16   : > { %422 = vmatpush3.msra.mxu0 %v188_v3  ;;  %439 = vmatpush3.msra.mxu1 %v188_v3 }
  0x17   : > { %423 = vmatprep.subr.mxu0 %v187_v4  ;;  %435 = vmatprep.subr.mxu1 %v187_v4 }
  0x18   : > { %424 = vmatpush3.msra.mxu0 %v187_v4  ;;  %440 = vmatpush3.msra.mxu1 %v187_v4 }
  0x19   : > { %425 = vmatprep.mubr.msk.f32.mxu0 %vm192_vm1, %v183_v5  ;;  %428 = vmatprep.mubr.msk.f32.mxu1 %vm192_vm1, %v185_v6 }
  0x1a   : > { %426 = vmatmul.mubr.msk.f32.vlgmr.msra.gmra.mxu0 %vm192_vm1, %v184_v7  ;;  %429 = vmatmul.mubr.msk.f32.vlgmr.msra.gmra.mxu1 %vm192_vm1, %v186_v8 }
  0xda   : > { %v427_v9 = vpop.f32.mrf.mxu0  ;;  %v430_v10 = vpop.f32.mrf.mxu1 }
  0xdb   : > { %295 = vst [vmem:[%s181_s7 + $0x8] sm:$0xff] %v427_v9  ;;  %297 = vst [vmem:[%s181_s7 + $0x18] sm:$0xff] %v430_v10 }
  0xdc   : > { %v275_v11 = vpop.f32.mrf.mxu0  ;;  %v285_v12 = vpop.f32.mrf.mxu1 }
  0xdd   : > { %294 = vst [vmem:[%s181_s7] sm:$0xff] %v275_v11  ;;  %296 = vst [vmem:[%s181_s7 + $0x10] sm:$0xff] %v285_v12 }
  0xde PF: > { %s12_s13 = sadd.s32 1, %s519_s13   ;;  %s608_s9 = smov %s511_s11 }
  0xdf   : > { %p9_p7 = scmp.ge.s32.totalorder %s12_s13, 6   ;;  %s609_s10 = smov %s515_s12 }
  0xe0   : > { %s610_s11 = smov %s613_s14  ;;  %s611_s12 = smov %s617_s15 }
  0xe1   :  { %11 = sbr.rel (!%p9_p7) target bundleno = 3 (0x3), region = 58 }

</bundles_post_ra>
